<compile_context>
chip_gen: v5e
topology: v5e:2x2
jax: 0.10.0
libtpu: 0.0.40
codegen_flags: <defaults>
</compile_context>

<pallas_src>
import math
from functools import partial

import jax
import jax.numpy as jnp
from jax.experimental import pallas as pl
from jax.experimental.pallas import tpu as pltpu


# ---------------------------------------------------------------------------
# Hardware-aware sizing helpers.
# ---------------------------------------------------------------------------

def _vmem_budgets():
    """Returns (pipeline-buffer budget, vmem_limit_bytes, is_v7x_like)."""
    try:
        vmem_bytes = int(pltpu.get_tpu_info().vmem_capacity_bytes)
    except Exception:
        vmem_bytes = 64 * 1024 * 1024            # unknown -> be conservative
    if vmem_bytes >= 96 * 1024 * 1024:            # v5e / v6e: 128 MiB VMEM
        return 20 * 1024 * 1024, 64 * 1024 * 1024, False
    # v7x-like: 64 MiB per TensorCore, 2 TensorCores per chip.
    return 14 * 1024 * 1024, 32 * 1024 * 1024, True


def _sublane_quantum(itemsize):
    return max(8, 32 // itemsize)                 # 8 f32, 16 bf16, 32 int8/fp8


def _choose_row_tile(rows, num_groups, row_len, itemsize, budget, is_v7x):
    """Rows of the (N*G, L) view per fused grid step; 0 -> lane-split path."""
    q = _sublane_quantum(itemsize)
    # Per-element VMEM of one row: in + out double-buffered in x.dtype, ~8 B
    # of in-kernel f32 temporaries (upcast + centered copy), 8 B resident
    # f32 weight + bias.
    per_row = row_len * (4 * itemsize + 16)
    cap = budget // per_row

    if rows <= q:                                 # full row dim as one block
        return rows if cap >= rows else 0
    if cap < q:                                   # a q-row block does not fit
        return 0

    unit = (q * num_groups) // math.gcd(q, num_groups)   # lcm(q, G)
    if unit > min(cap, rows):
        unit = q
    max_k = max(1, rows // unit)
    k = max(1, min(cap // unit, max_k))
    if is_v7x and max_k >= 2:
        # Megacore: keep >= 2 grid steps per TensorCore when there is enough
        # work; single-TC chips keep the largest tile the budget allows.
        k = min(k, max(1, max_k // 4))
    return unit * k


# ---------------------------------------------------------------------------
# Fused single-sweep path (row block fully resident in VMEM).
# ---------------------------------------------------------------------------

def _gn_fused_kernel(x_ref, w_ref, b_ref, o_ref, *, eps, inv_n):
    # x_ref / o_ref: (Rt, L) block; w_ref / b_ref: (Rt, L) f32 affine params.
    x = x_ref[...].astype(jnp.float32)
    # True two-pass statistics on the VMEM-resident block (extra VPU/XLU work
    # is free under the HBM roofline; avoids E[x^2]-E[x]^2 cancellation).
    mean = jnp.sum(x, axis=-1, keepdims=True) * inv_n
    xc = x - mean
    var = jnp.sum(xc * xc, axis=-1, keepdims=True) * inv_n
    inv_std = jax.lax.rsqrt(var + jnp.float32(eps))
    scale = w_ref[...] * inv_std
    o_ref[...] = (xc * scale + b_ref[...]).astype(o_ref.dtype)


def _gn_fused(x2, w_rows, b_rows, row_tile, num_groups, eps, vmem_limit):
    rows, L = x2.shape
    G = num_groups
    if row_tile % G == 0:
        # One row-block worth of affine params, resident in VMEM for the whole
        # grid: DMA'd once, single buffer, no per-step w/b traffic.
        w_full = jnp.tile(w_rows, (row_tile // G, 1))
        b_full = jnp.tile(b_rows, (row_tile // G, 1))
        wb_spec = pl.BlockSpec(memory_space=pltpu.MemorySpace.VMEM)
    else:
        # Rare fallback: cycle through lcm(Rt, G) pre-tiled rows.
        wr = (row_tile * G) // math.gcd(row_tile, G)
        w_full = jnp.tile(w_rows, (wr // G, 1))
        b_full = jnp.tile(b_rows, (wr // G, 1))
        period = wr // row_tile
        wb_spec = pl.BlockSpec((row_tile, L), lambda r: (r % period, 0))

    return pl.pallas_call(
        partial(_gn_fused_kernel, eps=float(eps), inv_n=1.0 / L),
        out_shape=jax.ShapeDtypeStruct((rows, L), x2.dtype),
        grid=(pl.cdiv(rows, row_tile),),
        in_specs=[pl.BlockSpec((row_tile, L), lambda r: (r, 0)),
                  wb_spec, wb_spec],
        out_specs=pl.BlockSpec((row_tile, L), lambda r: (r, 0)),
        compiler_params=pltpu.CompilerParams(
            dimension_semantics=("parallel",),
            vmem_limit_bytes=vmem_limit),
    )(x2, w_full, b_full)


# ---------------------------------------------------------------------------
# Lane-split streaming path (a single row block exceeds the VMEM budget).
# ---------------------------------------------------------------------------

def _gn_stats_kernel(x_ref, s_ref, ss_ref, *, row_len, lane_tile, mask_lanes):
    c = pl.program_id(1)
    x = x_ref[...].astype(jnp.float32)                 # (Rt, Lt)
    if mask_lanes:                                     # partial last lane chunk
        lane = jax.lax.broadcasted_iota(jnp.int32, x.shape, 1) + c * lane_tile
        x = jnp.where(lane < row_len, x, 0.0)

    @pl.when(c == 0)
    def _():
        s_ref[...] = jnp.zeros_like(s_ref)
        ss_ref[...] = jnp.zeros_like(ss_ref)

    s_ref[...] += jnp.sum(x, axis=-1, keepdims=True)
    ss_ref[...] += jnp.sum(x * x, axis=-1, keepdims=True)


def _gn_norm_kernel(x_ref, mean_ref, istd_ref, w_ref, b_ref, o_ref):
    x = x_ref[...].astype(jnp.float32)
    scale = w_ref[...] * istd_ref[...]
    o_ref[...] = ((x - mean_ref[...]) * scale + b_ref[...]).astype(o_ref.dtype)


def _gn_lane_split(x2, w_rows, b_rows, num_groups, eps, budget, vmem_limit,
                   itemsize):
    rows, L = x2.shape
    G = num_groups
    q = _sublane_quantum(itemsize)
    base = (q * G) // math.gcd(q, G)                   # lcm(q, G)
    row_tile = rows if rows <= base else base          # multiple of G either way
    # Pass-2 per-element VMEM: x in/out double-buffered + f32 temporaries +
    # double-buffered f32 w/b lane chunks.
    per_elem = 4 * itemsize + 24
    lane_cap = budget // (row_tile * per_elem)
    lane_tile = L if lane_cap >= L else max(128, (lane_cap // 128) * 128)

    nr = pl.cdiv(rows, row_tile)
    nc = pl.cdiv(L, lane_tile)

    # Pass 1: per-row sum / sum-of-squares accumulated over lane chunks.
    s, ss = pl.pallas_call(
        partial(_gn_stats_kernel, row_len=L, lane_tile=lane_tile,
                mask_lanes=(L % lane_tile) != 0),
        out_shape=(jax.ShapeDtypeStruct((rows, 1), jnp.float32),
                   jax.ShapeDtypeStruct((rows, 1), jnp.float32)),
        grid=(nr, nc),
        in_specs=[pl.BlockSpec((row_tile, lane_tile), lambda r, c: (r, c))],
        out_specs=(pl.BlockSpec((row_tile, 1), lambda r, c: (r, 0)),
                   pl.BlockSpec((row_tile, 1), lambda r, c: (r, 0))),
        compiler_params=pltpu.CompilerParams(
            dimension_semantics=("parallel", "arbitrary"),
            vmem_limit_bytes=vmem_limit),
    )(x2)

    # TODO(synk): the streaming path uses single-pass E[x^2]-E[x]^2 variance
    # (f32 accumulation); a shifted/Welford variant would avoid cancellation
    # for data with |mean| >> std at the cost of an extra HBM read pass.
    inv_n = jnp.float32(1.0 / L)
    mean = s * inv_n
    var = jnp.maximum(ss * inv_n - mean * mean, 0.0)
    inv_std = jax.lax.rsqrt(var + jnp.float32(eps))

    # Row-block -> group alignment is identical for every row block (row_tile
    # is a multiple of G), so one (row_tile, L) affine slab serves all blocks.
    w_exp = jnp.tile(w_rows, (row_tile // G, 1))
    b_exp = jnp.tile(b_rows, (row_tile // G, 1))

    # Pass 2: normalize.  Lane axis is the OUTER grid axis so each w/b lane
    # chunk is fetched once per chunk instead of once per row block.
    return pl.pallas_call(
        _gn_norm_kernel,
        out_shape=jax.ShapeDtypeStruct((rows, L), x2.dtype),
        grid=(nc, nr),
        in_specs=[
            pl.BlockSpec((row_tile, lane_tile), lambda c, r: (r, c)),
            pl.BlockSpec((row_tile, 1), lambda c, r: (r, 0)),
            pl.BlockSpec((row_tile, 1), lambda c, r: (r, 0)),
            pl.BlockSpec((row_tile, lane_tile), lambda c, r: (0, c)),
            pl.BlockSpec((row_tile, lane_tile), lambda c, r: (0, c)),
        ],
        out_specs=pl.BlockSpec((row_tile, lane_tile), lambda c, r: (r, c)),
        compiler_params=pltpu.CompilerParams(
            dimension_semantics=("parallel", "parallel"),
            vmem_limit_bytes=vmem_limit),
    )(x2, mean, inv_std, w_exp, b_exp)


# ---------------------------------------------------------------------------
# Public wrapper.
# ---------------------------------------------------------------------------

def group_norm_same_dtype(x, weight, bias, num_groups, eps=1e-5, *,
                          vmem_budget_bytes=None):
    """GroupNorm over (N, C, *) input; result cast back to x.dtype."""
    N, C = x.shape[0], x.shape[1]
    G = num_groups
    if C % G != 0:
        raise ValueError("num_channels must be divisible by num_groups")
    Cg = C // G
    HW = int(math.prod(x.shape[2:]))
    L = Cg * HW
    rows = N * G
    itemsize = jnp.dtype(x.dtype).itemsize

    budget, vmem_limit, is_v7x = _vmem_budgets()
    if vmem_budget_bytes is not None:
        budget = vmem_budget_bytes

    if weight is None:                              # affine=False support
        weight = jnp.ones((C,), jnp.float32)
    if bias is None:
        bias = jnp.zeros((C,), jnp.float32)
    # Per-channel params expanded to one f32 row per group, matching the
    # flattened (Cg, HW) row layout.
    w_rows = jnp.repeat(weight.astype(jnp.float32).reshape(G, Cg), HW, axis=1)
    b_rows = jnp.repeat(bias.astype(jnp.float32).reshape(G, Cg), HW, axis=1)

    x2 = x.reshape(rows, L)
    row_tile = _choose_row_tile(rows, G, L, itemsize, budget, is_v7x)
    if row_tile > 0:
        out2 = _gn_fused(x2, w_rows, b_rows, row_tile, G, eps, vmem_limit)
    else:
        out2 = _gn_lane_split(x2, w_rows, b_rows, G, eps, budget, vmem_limit,
                              itemsize)
    return out2.reshape(x.shape)


def _reference_group_norm(x, weight, bias, num_groups, eps=1e-5):
    N, C = x.shape[0], x.shape[1]
    xr = x.astype(jnp.float32).reshape(N, num_groups, -1)
    mean = xr.mean(axis=-1, keepdims=True)
    var = ((xr - mean) ** 2).mean(axis=-1, keepdims=True)
    xn = ((xr - mean) / jnp.sqrt(var + eps)).reshape(x.shape)
    bshape = (1, C) + (1,) * (x.ndim - 2)
    y = xn * weight.astype(jnp.float32).reshape(bshape) \
        + bias.astype(jnp.float32).reshape(bshape)
    return y.astype(x.dtype)


if __name__ == "__main__":
    eps = 1e-5

    # Module config: GroupNormSameDtype(num_groups=2, num_channels=4),
    # parameters exactly as reset_parameters(): ones / zeros.
    num_groups, num_channels = 2, 4
    x = jax.random.normal(jax.random.PRNGKey(0), (2, num_channels, 16, 16),
                          dtype=jnp.float32)
    weight = jnp.ones((num_channels,), jnp.float32)
    bias = jnp.zeros((num_channels,), jnp.float32)

    y = jax.block_until_ready(group_norm_same_dtype(x, weight, bias,
                                                    num_groups, eps))
    y_ref = _reference_group_norm(x, weight, bias, num_groups, eps)
    assert y.shape == x.shape and y.dtype == x.dtype
    assert jnp.allclose(y, y_ref, atol=1e-5, rtol=1e-5)

    # Non-128-multiple row length, non-trivial affine, non-zero mean
    # (exercises the two-pass statistics and full-dim blocks).
    k1, k2, k3 = jax.random.split(jax.random.PRNGKey(1), 3)
    x2 = jax.random.normal(k1, (2, 6, 14, 14), dtype=jnp.float32) * 3.0 + 5.0
    w2 = jax.random.normal(k2, (6,), jnp.float32)
    b2 = jax.random.normal(k3, (6,), jnp.float32)
    y2 = jax.block_until_ready(group_norm_same_dtype(x2, w2, b2, 3, eps))
    assert jnp.allclose(y2, _reference_group_norm(x2, w2, b2, 3, eps),
                        atol=1e-4, rtol=1e-4)

    # bf16 input: output cast back to bf16.
    xb = jax.random.normal(jax.random.PRNGKey(2), (2, 8, 16, 16),
                           dtype=jnp.bfloat16)
    wb = jnp.ones((8,), jnp.float32)
    bb = jnp.zeros((8,), jnp.float32)
    yb = jax.block_until_ready(group_norm_same_dtype(xb, wb, bb, 4, eps))
    assert yb.dtype == jnp.bfloat16
    assert jnp.allclose(
        yb.astype(jnp.float32),
        _reference_group_norm(xb, wb, bb, 4, eps).astype(jnp.float32),
        atol=2e-2, rtol=2e-2)

    # Force the lane-split streaming path with a tiny budget override to
    # validate the two-kernel (stats + normalize) path end to end, including
    # partial row blocks and masked partial lane chunks.
    k4, k5, k6 = jax.random.split(jax.random.PRNGKey(3), 3)
    x4 = jax.random.normal(k4, (10, 4, 9, 9), dtype=jnp.float32)
    w4 = jax.random.normal(k5, (4,), jnp.float32)
    b4 = jax.random.normal(k6, (4,), jnp.float32)
    y4 = jax.block_until_ready(
        group_norm_same_dtype(x4, w4, b4, 1, eps, vmem_budget_bytes=4096))
    assert jnp.allclose(y4, _reference_group_norm(x4, w4, b4, 1, eps),
                        atol=1e-4, rtol=1e-4)

    print("KERNEL_OK")
</pallas_src>

<mosaic_0001>
module attributes {stable_mosaic.version = 11 : i64} {
  func.func @_gn_fused_kernel(%arg0: i32, %arg1: memref<4x512xf32, #tpu.memory_space<vmem>>, %arg2: memref<4x512xf32, #tpu.memory_space<vmem>>, %arg3: memref<4x512xf32, #tpu.memory_space<vmem>>, %arg4: memref<4x512xf32, #tpu.memory_space<vmem>>) attributes {dimension_semantics = [#tpu.dimension_semantics<parallel>], iteration_bounds = array<i64: 1>, scalar_prefetch = 0 : i64, scratch_operands = 0 : i64, tpu.core_type = #tpu.core_type<tc>, window_params = [{transform_indices = @transform_0, window_bounds = array<i64: 4, 512>}, {pipeline_mode = #tpu.pipeline_mode<synchronous>, transform_indices = @transform_1, window_bounds = array<i64: 4, 512>}, {pipeline_mode = #tpu.pipeline_mode<synchronous>, transform_indices = @transform_2, window_bounds = array<i64: 4, 512>}, {transform_indices = @transform_3, window_bounds = array<i64: 4, 512>}]} {
    %c0 = arith.constant 0 : index
    %c0_0 = arith.constant 0 : index
    %0 = vector.load %arg1[%c0, %c0_0] : memref<4x512xf32, #tpu.memory_space<vmem>>, vector<4x512xf32>
    %cst = arith.constant dense<0.000000e+00> : vector<4xf32>
    %1 = vector.multi_reduction <add>, %0, %cst [1] : vector<4x512xf32> to vector<4xf32>
    %2 = vector.shape_cast %1 : vector<4xf32> to vector<4x1xf32>
    %cst_1 = arith.constant 0.001953125 : f32
    %3 = vector.broadcast %cst_1 : f32 to vector<4x1xf32>
    %4 = arith.mulf %2, %3 : vector<4x1xf32>
    %5 = vector.broadcast %4 : vector<4x1xf32> to vector<4x512xf32>
    %6 = arith.subf %0, %5 : vector<4x512xf32>
    %7 = arith.mulf %6, %6 : vector<4x512xf32>
    %cst_2 = arith.constant dense<0.000000e+00> : vector<4xf32>
    %8 = vector.multi_reduction <add>, %7, %cst_2 [1] : vector<4x512xf32> to vector<4xf32>
    %9 = vector.shape_cast %8 : vector<4xf32> to vector<4x1xf32>
    %cst_3 = arith.constant 0.001953125 : f32
    %10 = vector.broadcast %cst_3 : f32 to vector<4x1xf32>
    %11 = arith.mulf %9, %10 : vector<4x1xf32>
    %cst_4 = arith.constant 9.99999974E-6 : f32
    %12 = vector.broadcast %cst_4 : f32 to vector<4x1xf32>
    %13 = arith.addf %11, %12 : vector<4x1xf32>
    %14 = math.rsqrt %13 : vector<4x1xf32>
    %c0_5 = arith.constant 0 : index
    %c0_6 = arith.constant 0 : index
    %15 = vector.load %arg2[%c0_5, %c0_6] : memref<4x512xf32, #tpu.memory_space<vmem>>, vector<4x512xf32>
    %16 = vector.broadcast %14 : vector<4x1xf32> to vector<4x512xf32>
    %17 = arith.mulf %15, %16 : vector<4x512xf32>
    %18 = arith.mulf %6, %17 : vector<4x512xf32>
    %c0_7 = arith.constant 0 : index
    %c0_8 = arith.constant 0 : index
    %19 = vector.load %arg3[%c0_7, %c0_8] : memref<4x512xf32, #tpu.memory_space<vmem>>, vector<4x512xf32>
    %20 = arith.addf %18, %19 : vector<4x512xf32>
    %c0_9 = arith.constant 0 : index
    %c0_10 = arith.constant 0 : index
    %21 = vector.load %arg4[%c0_9, %c0_10] : memref<4x512xf32, #tpu.memory_space<vmem>>, vector<4x512xf32>
    tpu.vector_store %arg4[%c0_9, %c0_10], %20 {strides = array<i32>} : memref<4x512xf32, #tpu.memory_space<vmem>>, vector<4x512xf32>,
    return
  }
  func.func @transform_0(%arg0: i32) -> (i32, i32) {
    %c0_i32 = arith.constant 0 : i32
    %c0_i32_0 = arith.constant 0 : i32
    return %arg0, %c0_i32 : i32, i32
  }
  func.func @transform_1(%arg0: i32) -> (i32, i32) {
    %c0_i32 = arith.constant 0 : i32
    %c0_i32_0 = arith.constant 0 : i32
    %c0_i32_1 = arith.constant 0 : i32
    return %c0_i32, %c0_i32_0 : i32, i32
  }
  func.func @transform_2(%arg0: i32) -> (i32, i32) {
    %c0_i32 = arith.constant 0 : i32
    %c0_i32_0 = arith.constant 0 : i32
    %c0_i32_1 = arith.constant 0 : i32
    return %c0_i32, %c0_i32_0 : i32, i32
  }
  func.func @transform_3(%arg0: i32) -> (i32, i32) {
    %c0_i32 = arith.constant 0 : i32
    %c0_i32_0 = arith.constant 0 : i32
    return %arg0, %c0_i32 : i32, i32
  }
}

</mosaic_0001>

<bundles_post_ra>
// kernel: tpu_custom_call.1
= control target key start
LH: loop header
LB: loop body
LE: loop exit
PB: predicated region body
PF: predicated region fallthrough
CT: control target
= control target key end

     0   :  { %8 = vsyncpa [#allocation3], 0  ;;  %s316_s0 = inlined_call_operand.hbm [shape: f32[4,512], index: 0, kind: input, shape index: {}]   ;;  %s317_s1 = inlined_call_operand.hbm [shape: f32[4,512], index: 1, kind: input, shape index: {}]   ;;  %s318_s2 = inlined_call_operand.hbm [shape: f32[4,512], index: 2, kind: input, shape index: {}]   ;;  %s319_s3 = inlined_call_operand.hbm [shape: f32[4,512], index: 3, kind: output, shape index: {}]  }
   0x1   :  { %9 = vsyncpa [#allocation6], 0  ;;  %s27_s14 = sshll.u32 %s317_s1, 4  ;;  %s28_s14 = int_to_ptr.hbm [resolvable:$true] %s27_s14 }
   0x2   :  { %10 = vsyncpa [#allocation4], 0  ;;  %s271_s15 = smov [#allocation5]   ;;  %s16_s19 = sshll.u32 %s316_s0, 4  ;;  %s17_s19 = int_to_ptr.hbm [resolvable:$true] %s16_s19 }
   0x3   :  { %s29_s16 = sshll.u32 %s271_s15, 4  ;;  %s272_s20 = smov [#allocation2]   ;;  %s30_s16 = int_to_ptr.vmem [resolvable:$true] %s29_s16 }
   0x4   :  { %32 = dma.hbm_to_vmem [thread:$0]  %s28_s14, 256, %s30_s16, [#allocation6]  }
   0x5   :  { %s18_s21 = sshll.u32 %s272_s20, 4  ;;  %s38_s24 = sshll.u32 %s318_s2, 4  ;;  %s19_s21 = int_to_ptr.vmem [resolvable:$true] %s18_s21  ;;  %s39_s24 = int_to_ptr.hbm [resolvable:$true] %s38_s24 }
   0x6   :  { %21 = dma.hbm_to_vmem [thread:$0]  %s17_s19, 256, %s19_s21, [#allocation3]  }
   0x7   :  { %s273_s1 = smov [#allocation7]  }
   0x8   :  { %s40_s25 = sshll.u32 %s273_s1, 4  ;;  %s41_s25 = int_to_ptr.vmem [resolvable:$true] %s40_s25 }
   0x9   :  { %43 = dma.hbm_to_vmem [thread:$0]  %s39_s24, 256, %s41_s25, [#allocation6]  }
   0xa   :  { %265 = dma.done.wait [#allocation3], 256  }
   0xb   :  { %266 = vsyncadd [#allocation3], 4294967040 }
   0xc   :  { %267 = dma.done.wait [#allocation6], 512  }
   0xd   :  { %268 = vsyncadd [#allocation6], 4294966784  ;;  %v56_v0 = vld [vmem:[#allocation2] sm:$0xff]  ;;  %v57_v1 = vld [vmem:[#allocation2 + $0x8] sm:$0xff]  ;;  %vm71_vm0 = vcmask 1043456   ;;  %s275_s0 = smov [#allocation8]  }
   0xe   :  { %60 = vst [vmem:[#allocation1] ss:$2 sm:$0xff] %v56_v0  ;;  %v274_v13 = vmov 839922192   ;;  %v126_v43 = vld [vmem:[#allocation5] sm:$0xff]  ;;  %v127_v44 = vld [vmem:[#allocation5 + $0x8] sm:$0xff] }
   0xf   :  { %62 = vst [vmem:[#allocation1 + $0x10] ss:$2 sm:$0xff] %v57_v1  ;;  %v84_v14 = vunpack.c.l.s4 %v274_v13  ;;  %v138_v49 = vld [vmem:[#allocation7] sm:$0xff]  ;;  %v139_v50 = vld [vmem:[#allocation7 + $0x8] sm:$0xff]  ;;  %s149_s2 = sshll.u32 %s275_s0, 4  ;;  %s151_s28 = sshll.u32 %s319_s3, 4  ;;  %s150_s2 = int_to_ptr.vmem [resolvable:$true] %s149_s2  ;;  %s152_s28 = int_to_ptr.hbm [resolvable:$true] %s151_s28 }
  0x11   :  { %v85_v15 = vunpack.c.0.s8 %v84_v14 }
  0x15   :  { %v63_v2 = vld.sshfl [vmem:[#allocation1] sm:$0xff pattern:$0x75316420]  ;;  %v64_v3 = vld.sshfl [vmem:[#allocation1 + $0x8] sm:$0xff pattern:$0x75316420] }
  0x16   :  { %v65_v4 = vld.sshfl [vmem:[#allocation1 + $0x10] sm:$0xff pattern:$0x75316420]  ;;  %v66_v5 = vld.sshfl [vmem:[#allocation1 + $0x18] sm:$0xff pattern:$0x75316420] }
  0x17   :  { %v72_v6 = vsel %vm71_vm0, %v63_v2, 0.0  ;;  %v73_v7 = vsel %vm71_vm0, %v64_v3, 0.0  ;;  %v75_v8 = vsel %vm71_vm0, %v65_v4, 0.0  ;;  %v77_v10 = vsel %vm71_vm0, %v66_v5, 0.0 }
  0x18   :  { %v74_v9 = vadd.f32 %v73_v7, %v72_v6 }
  0x1a   :  { %v76_v11 = vadd.f32 %v75_v8, %v74_v9 }
  0x1c   :  { %v78_v12 = vadd.f32 %v77_v10, %v76_v11 }
  0x1e   :  { %79 = vadd.xlane.f32.xlu0 %v78_v12 }
  0x91   :  { %v80_v16 = vpop.xlane.xlu0 %79 }
  0x92   :  { %v81_v17 = vmul.f32 0.001953125, %v80_v16 }
  0x94   :  { %v86_v18 = vperm.slane %v81_v17, %v85_v15 }
  0x96   :  { %v88_v19 = vsub.f32 %v56_v0, %v86_v18  ;;  %v89_v20 = vsub.f32 %v57_v1, %v86_v18 }
  0x98   :  { %v90_v21 = vmul.f32 %v88_v19, %v88_v19  ;;  %v91_v22 = vmul.f32 %v89_v20, %v89_v20 }
  0x9a   :  { %94 = vst [vmem:[#allocation1] ss:$2 sm:$0xff] %v90_v21 }
  0x9b   :  { %96 = vst [vmem:[#allocation1 + $0x10] ss:$2 sm:$0xff] %v91_v22 }
  0xa1   :  { %v97_v23 = vld.sshfl [vmem:[#allocation1] sm:$0xff pattern:$0x75316420]  ;;  %v98_v24 = vld.sshfl [vmem:[#allocation1 + $0x8] sm:$0xff pattern:$0x75316420] }
  0xa2   :  { %v99_v25 = vld.sshfl [vmem:[#allocation1 + $0x10] sm:$0xff pattern:$0x75316420]  ;;  %v105_v26 = vsel %vm71_vm0, %v97_v23, 0.0  ;;  %v106_v27 = vsel %vm71_vm0, %v98_v24, 0.0 }
  0xa3   :  { %v100_v28 = vld.sshfl [vmem:[#allocation1 + $0x18] sm:$0xff pattern:$0x75316420]  ;;  %v107_v29 = vadd.f32 %v106_v27, %v105_v26  ;;  %v108_v30 = vsel %vm71_vm0, %v99_v25, 0.0 }
  0xa4   :  { %v110_v32 = vsel %vm71_vm0, %v100_v28, 0.0 }
  0xa5   :  { %v109_v31 = vadd.f32 %v108_v30, %v107_v29 }
  0xa7   :  { %v111_v33 = vadd.f32 %v110_v32, %v109_v31 }
  0xa9   :  { %112 = vadd.xlane.f32.xlu0 %v111_v33 }
 0x11c   :  { %v113_v34 = vpop.xlane.xlu0 %112 }
 0x11d   :  { %v114_v35 = vmul.f32 0.001953125, %v113_v34 }
 0x11f   :  { %v115_v36 = vadd.f32 1e-05, %v114_v35 }
 0x121   :  { %167 = vrsqrt.f32 %v115_v36  ;;  %vm122_vm2 = vweird.f32 %v115_v36 }
 0x127   :  { %v168_v37 = vpop.eup %167 }
 0x128   :  { %v117_v38 = vmul.f32 %v168_v37, %v115_v36  ;;  %vm123_vm1 = vweird.f32 %v168_v37 }
 0x129   :  { %vm124_vm3 = vmor %vm122_vm2, %vm123_vm1 }
 0x12a   :  { %v118_v39 = vmul.f32 %v168_v37, %v117_v38 }
 0x12c   :  { %v119_v40 = vmul.f32 0.5, %v118_v39 }
 0x12e   :  { %v120_v41 = vsub.f32 1.5, %v119_v40 }
 0x130   :  { %v121_v42 = vmul.f32 %v168_v37, %v120_v41 }
 0x132   :  { %v125_v45 = vsel %vm124_vm3, %v168_v37, %v121_v42 }
 0x133   :  { %v132_v46 = vperm.slane %v125_v45, %v85_v15 }
 0x135   :  { %v134_v47 = vmul.f32 %v132_v46, %v126_v43  ;;  %v135_v48 = vmul.f32 %v132_v46, %v127_v44 }
 0x137   :  { %v136_v51 = vmul.f32 %v134_v47, %v88_v19  ;;  %v137_v52 = vmul.f32 %v135_v48, %v89_v20 }
 0x139   :  { %v140_v53 = vadd.f32 %v138_v49, %v136_v51  ;;  %v141_v54 = vadd.f32 %v139_v50, %v137_v52 }
 0x13b   :  { %142 = vst [vmem:[#allocation8] sm:$0xff] %v140_v53 }
 0x13c   :  { %143 = vst [vmem:[#allocation8 + $0x8] sm:$0xff] %v141_v54 }
 0x13d   :  { %154 = dma.vmem_to_hbm [thread:$0]  %s150_s2, 256, %s152_s28, [#allocation4]  }
 0x13e   :  { %269 = dma.done.wait [#allocation4], 256  }
 0x13f   :  { %270 = vsyncadd [#allocation4], 4294967040 }
 0x140   :  { %159 = vsyncpa [#allocation3], 1 }
 0x141   :  { %160 = vsyncpa [#allocation6], 1 }
 0x142   :  { %161 = vsyncpa [#allocation4], 1 }

</bundles_post_ra>
